<compile_context>
chip_gen: v5e
topology: v5e:2x2
jax: 0.10.0
libtpu: 0.0.40
codegen_flags: <defaults>
</compile_context>

<pallas_src>
import jax
import jax.numpy as jnp
from jax.experimental import pallas as pl
from jax.experimental.pallas import tpu as pltpu

INPUT_DIM = 256
HIDDEN_DIMS = [128, 64, 32]
NUM_RISK = 5
HEAD_HIDDEN = 16
EPS = 1e-5

# Packed-output layout (lane dim = 64, full-array-width block so it's legal).
OUT_FE = HIDDEN_DIMS[-1]        # 32 : feature_embedding lanes [0, 32)
OUT_RF = OUT_FE + NUM_RISK      # 37 : risk_factors     lanes [32, 37)
OUT_OR = OUT_RF + 1             # 38 : overall_risk     lane  [37, 38)
OUT_WIDTH = 64


def _round_up(n, m):
    return (n + m - 1) // m * m


def _risk_kernel(x_ref,
                 w0_ref, p0_ref, w1_ref, p1_ref, w2_ref, p2_ref,
                 hw1_ref, hb1_ref, hw2_ref, hb2_ref,
                 cw1_ref, cb1_ref, cw2_ref, cb2_ref,
                 out_ref):
    """One (TILE_B, 256) f32 batch tile -> packed (TILE_B, 64) f32 output tile."""

    def shared_block(h, w_ref, p_ref):
        # Linear (bf16 MXU operands, f32 accumulate) -> ReLU -> folded BN.
        z = jnp.dot(h.astype(jnp.bfloat16), w_ref[...],
                    preferred_element_type=jnp.float32)
        z = jnp.maximum(z + p_ref[0:1, :], 0.0)          # Linear bias + ReLU
        return z * p_ref[1:2, :] + p_ref[2:3, :]         # BN (eval); Dropout = id

    h = shared_block(x_ref[...], w0_ref, p0_ref)         # (tb, 128)
    h = shared_block(h, w1_ref, p1_ref)                  # (tb, 64)
    # Last shared layer is zero-padded 32 -> 64 wide: lanes [0,32) hold the
    # feature embedding, lanes [32,64) are exact zeros.
    fe = shared_block(h, w2_ref, p2_ref)                 # (tb, 64)

    # 5 fused risk heads. hw2/hb2 were lifted so the head sigmoids land
    # directly in lanes [32,37) of a 64-wide tensor (no lane shifting needed).
    t = jnp.maximum(
        jnp.dot(fe.astype(jnp.bfloat16), hw1_ref[...],
                preferred_element_type=jnp.float32) + hb1_ref[...], 0.0)
    rf = jax.nn.sigmoid(
        jnp.dot(t.astype(jnp.bfloat16), hw2_ref[...],
                preferred_element_type=jnp.float32) + hb2_ref[...])

    # Combiner. cw1's rows outside lanes [32,37) are zero, so the sigmoid(0)
    # junk in the other lanes of rf contributes exactly nothing. cw2/cb2 are
    # lifted so the overall risk lands in lane 37.
    c = jnp.maximum(
        jnp.dot(rf.astype(jnp.bfloat16), cw1_ref[...],
                preferred_element_type=jnp.float32) + cb1_ref[...], 0.0)
    o = jax.nn.sigmoid(
        jnp.dot(c.astype(jnp.bfloat16), cw2_ref[...],
                preferred_element_type=jnp.float32) + cb2_ref[...])

    # Single lane-dense store: [fe(32) | rf(5) | overall(1) | zeros(26)].
    lane = jax.lax.broadcasted_iota(jnp.int32, out_ref.shape, 1)
    out_ref[...] = jnp.where(lane < OUT_FE, fe,
                             jnp.where(lane < OUT_RF, rf,
                                       jnp.where(lane < OUT_OR, o, 0.0)))


def _pick_tile_b(B):
    # Big tiles amortize the ~0.35us per-grid-step overhead; at least 2 grid
    # steps whenever possible so v7x's two TensorCores split the parallel
    # batch axis; multiple of 16 sublanes; cap keeps the double-buffered f32
    # input + temporaries comfortably inside the 32 MiB VMEM request.
    tb = _round_up(max(pl.cdiv(B, 2), 1), 16)
    return max(16, min(2048, tb))


def risk_assessor_forward(x, packed_params, tile_b=None):
    """x: (B, INPUT_DIM) float32. packed_params: tuple from pack_params()."""
    B = x.shape[0]
    if tile_b is None:
        tile_b = _pick_tile_b(B)
    assert tile_b % 16 == 0

    grid = (pl.cdiv(B, tile_b),)   # ragged final tile handled by Pallas masking

    def const_spec(a):
        # Full-array block, constant index map -> stays VMEM-resident.
        return pl.BlockSpec(a.shape, lambda i: (0, 0))

    in_specs = ([pl.BlockSpec((tile_b, INPUT_DIM), lambda i: (i, 0))]
                + [const_spec(a) for a in packed_params])
    out_spec = pl.BlockSpec((tile_b, OUT_WIDTH), lambda i: (i, 0))

    out = pl.pallas_call(
        _risk_kernel,
        grid=grid,
        in_specs=in_specs,
        out_specs=out_spec,
        out_shape=jax.ShapeDtypeStruct((B, OUT_WIDTH), jnp.float32),
        compiler_params=pltpu.CompilerParams(
            dimension_semantics=("parallel",),
            vmem_limit_bytes=32 * 1024 * 1024),
    )(x, *packed_params)

    return {
        "risk_factors": out[:, OUT_FE:OUT_RF],
        "overall_risk": out[:, OUT_RF:OUT_OR],
        "feature_embedding": out[:, 0:OUT_FE],
    }


def init_raw_params(key):
    """Deterministic synthetic parameters matching the nn.Module's shapes.

    Weights are stored transposed w.r.t. PyTorch, i.e. (in_features, out_features).
    """
    keys = iter(jax.random.split(key, 64))
    dims = [INPUT_DIM] + HIDDEN_DIMS

    shared = []
    for i in range(len(HIDDEN_DIMS)):
        fi, fo = dims[i], dims[i + 1]
        w = jax.random.normal(next(keys), (fi, fo), jnp.float32) / jnp.sqrt(fi)
        b = 0.01 * jax.random.normal(next(keys), (fo,), jnp.float32)
        gamma = 1.0 + 0.1 * jax.random.normal(next(keys), (fo,), jnp.float32)
        beta = 0.1 * jax.random.normal(next(keys), (fo,), jnp.float32)
        rmean = 0.1 * jax.random.normal(next(keys), (fo,), jnp.float32)
        rvar = 0.5 + jax.random.uniform(next(keys), (fo,), jnp.float32)
        shared.append((w, b, gamma, beta, rmean, rvar))

    hd = HIDDEN_DIMS[-1]
    heads = []
    for _ in range(NUM_RISK):
        w1 = jax.random.normal(next(keys), (hd, HEAD_HIDDEN), jnp.float32) / jnp.sqrt(hd)
        b1 = 0.01 * jax.random.normal(next(keys), (HEAD_HIDDEN,), jnp.float32)
        w2 = jax.random.normal(next(keys), (HEAD_HIDDEN, 1), jnp.float32) / jnp.sqrt(HEAD_HIDDEN)
        b2 = 0.01 * jax.random.normal(next(keys), (1,), jnp.float32)
        heads.append((w1, b1, w2, b2))

    cw1 = jax.random.normal(next(keys), (NUM_RISK, HEAD_HIDDEN), jnp.float32) / jnp.sqrt(NUM_RISK)
    cb1 = 0.01 * jax.random.normal(next(keys), (HEAD_HIDDEN,), jnp.float32)
    cw2 = jax.random.normal(next(keys), (HEAD_HIDDEN, 1), jnp.float32) / jnp.sqrt(HEAD_HIDDEN)
    cb2 = 0.01 * jax.random.normal(next(keys), (1,), jnp.float32)

    return {"shared": shared, "heads": heads, "combiner": (cw1, cb1, cw2, cb2)}


def pack_params(raw):
    """Host-side packing: fold BN -> scale/shift, fuse heads, lift head and
    combiner weights into the 64-lane output-slab coordinate system, cast all
    matmul weights to bf16, pack per-layer vectors into (3, dim) arrays."""
    packed = []
    n_shared = len(raw["shared"])

    for idx, (w, b, gamma, beta, rmean, rvar) in enumerate(raw["shared"]):
        scale = gamma * jax.lax.rsqrt(rvar + EPS)
        shift = beta - rmean * scale
        if idx == n_shared - 1:
            # Zero-pad the last shared layer 32 -> 64 out-features so the
            # feature embedding lives in lanes [0,32) and lanes [32,64) are 0.
            pad = OUT_WIDTH - w.shape[1]
            w = jnp.pad(w, ((0, 0), (0, pad)))
            b = jnp.pad(b, (0, pad))
            scale = jnp.pad(scale, (0, pad))
            shift = jnp.pad(shift, (0, pad))
        p = jnp.stack([b, scale, shift], axis=0).astype(jnp.float32)  # (3, dim)
        packed.extend([w.astype(jnp.bfloat16), p])

    hd = HIDDEN_DIMS[-1]
    w1_list = [h[0] for h in raw["heads"]]
    b1_list = [h[1] for h in raw["heads"]]
    w2_list = [h[2] for h in raw["heads"]]
    b2_list = [h[3] for h in raw["heads"]]

    # Fused head layer 1: (64, 80); rows [32,64) are zero (match fe padding).
    hw1 = jnp.zeros((OUT_WIDTH, NUM_RISK * HEAD_HIDDEN), jnp.float32)
    hw1 = hw1.at[:hd, :].set(jnp.concatenate(w1_list, axis=1))
    hb1 = jnp.concatenate(b1_list)[None, :]                           # (1, 80)

    # Fused head layer 2 lifted into slab lanes: block-diagonal into cols 32..36.
    hw2 = jnp.zeros((NUM_RISK * HEAD_HIDDEN, OUT_WIDTH), jnp.float32)
    hb2 = jnp.zeros((1, OUT_WIDTH), jnp.float32)
    for h in range(NUM_RISK):
        hw2 = hw2.at[h * HEAD_HIDDEN:(h + 1) * HEAD_HIDDEN, OUT_FE + h].set(w2_list[h][:, 0])
        hb2 = hb2.at[0, OUT_FE + h].set(b2_list[h][0])
    packed.extend([hw1.astype(jnp.bfloat16), hb1, hw2.astype(jnp.bfloat16), hb2])

    # Combiner lifted into slab lanes: reads lanes [32,37), writes lane 37.
    cw1, cb1, cw2, cb2 = raw["combiner"]
    cw1w = jnp.zeros((OUT_WIDTH, HEAD_HIDDEN), jnp.float32).at[OUT_FE:OUT_RF, :].set(cw1)
    cw2w = jnp.zeros((HEAD_HIDDEN, OUT_WIDTH), jnp.float32).at[:, OUT_RF].set(cw2[:, 0])
    cb2w = jnp.zeros((1, OUT_WIDTH), jnp.float32).at[0, OUT_RF].set(cb2[0])
    packed.extend([cw1w.astype(jnp.bfloat16), cb1[None, :], cw2w.astype(jnp.bfloat16), cb2w])

    return tuple(packed)


def reference_forward(x, raw):
    """Pure-JAX reference mirroring the PyTorch module (eval mode:
    Linear -> ReLU -> BatchNorm1d(running stats) -> Dropout=id per block),
    with the same bf16-operand / f32-accumulate dots the kernel uses."""
    def dot_bf16(a, w):
        return jnp.dot(a.astype(jnp.bfloat16), w.astype(jnp.bfloat16),
                       preferred_element_type=jnp.float32)

    h = x
    for (w, b, gamma, beta, rmean, rvar) in raw["shared"]:
        z = jnp.maximum(dot_bf16(h, w) + b, 0.0)
        h = (z - rmean) * (gamma * jax.lax.rsqrt(rvar + EPS)) + beta
    fe = h
    rfs = []
    for (w1, b1, w2, b2) in raw["heads"]:
        t = jnp.maximum(dot_bf16(fe, w1) + b1, 0.0)
        rfs.append(jax.nn.sigmoid(dot_bf16(t, w2) + b2))
    rf = jnp.concatenate(rfs, axis=1)
    cw1, cb1, cw2, cb2 = raw["combiner"]
    c = jnp.maximum(dot_bf16(rf, cw1) + cb1, 0.0)
    o = jax.nn.sigmoid(dot_bf16(c, cw2) + cb2)
    return rf, o, fe


if __name__ == "__main__":
    key = jax.random.PRNGKey(0)
    k_x, k_p = jax.random.split(key)

    B = 50  # not a multiple of the tile -> exercises the ragged final tile
    x = jax.random.normal(k_x, (B, INPUT_DIM), jnp.float32)
    raw = init_raw_params(k_p)
    packed = pack_params(raw)

    out = risk_assessor_forward(x, packed)  # auto tile -> 32 rows, grid of 2
    jax.block_until_ready(out)

    rf_ref, or_ref, fe_ref = reference_forward(x, raw)
    assert out["risk_factors"].shape == (B, NUM_RISK)
    assert out["overall_risk"].shape == (B, 1)
    assert out["feature_embedding"].shape == (B, HIDDEN_DIMS[-1])
    assert jnp.allclose(out["risk_factors"], rf_ref, atol=2e-3, rtol=2e-3)
    assert jnp.allclose(out["overall_risk"], or_ref, atol=2e-3, rtol=2e-3)
    assert jnp.allclose(out["feature_embedding"], fe_ref, atol=2e-3, rtol=2e-3)

    print("KERNEL_OK")
</pallas_src>

<mosaic_0001>
module attributes {stable_mosaic.version = 11 : i64} {
  func.func @_risk_kernel(%arg0: i32, %arg1: memref<32x256xf32, #tpu.memory_space<vmem>>, %arg2: memref<256x128xbf16, #tpu.memory_space<vmem>>, %arg3: memref<3x128xf32, #tpu.memory_space<vmem>>, %arg4: memref<128x64xbf16, #tpu.memory_space<vmem>>, %arg5: memref<3x64xf32, #tpu.memory_space<vmem>>, %arg6: memref<64x64xbf16, #tpu.memory_space<vmem>>, %arg7: memref<3x64xf32, #tpu.memory_space<vmem>>, %arg8: memref<64x80xbf16, #tpu.memory_space<vmem>>, %arg9: memref<1x80xf32, #tpu.memory_space<vmem>>, %arg10: memref<80x64xbf16, #tpu.memory_space<vmem>>, %arg11: memref<1x64xf32, #tpu.memory_space<vmem>>, %arg12: memref<64x16xbf16, #tpu.memory_space<vmem>>, %arg13: memref<1x16xf32, #tpu.memory_space<vmem>>, %arg14: memref<16x64xbf16, #tpu.memory_space<vmem>>, %arg15: memref<1x64xf32, #tpu.memory_space<vmem>>, %arg16: memref<32x64xf32, #tpu.memory_space<vmem>>) attributes {dimension_semantics = [#tpu.dimension_semantics<parallel>], iteration_bounds = array<i64: 2>, scalar_prefetch = 0 : i64, scratch_operands = 0 : i64, tpu.core_type = #tpu.core_type<tc>, window_params = [{transform_indices = @transform_0, window_bounds = array<i64: 32, 256>}, {pipeline_mode = #tpu.pipeline_mode<synchronous>, transform_indices = @transform_1, window_bounds = array<i64: 256, 128>}, {pipeline_mode = #tpu.pipeline_mode<synchronous>, transform_indices = @transform_2, window_bounds = array<i64: 3, 128>}, {pipeline_mode = #tpu.pipeline_mode<synchronous>, transform_indices = @transform_3, window_bounds = array<i64: 128, 64>}, {pipeline_mode = #tpu.pipeline_mode<synchronous>, transform_indices = @transform_4, window_bounds = array<i64: 3, 64>}, {pipeline_mode = #tpu.pipeline_mode<synchronous>, transform_indices = @transform_5, window_bounds = array<i64: 64, 64>}, {pipeline_mode = #tpu.pipeline_mode<synchronous>, transform_indices = @transform_6, window_bounds = array<i64: 3, 64>}, {pipeline_mode = #tpu.pipeline_mode<synchronous>, transform_indices = @transform_7, window_bounds = array<i64: 64, 80>}, {pipeline_mode = #tpu.pipeline_mode<synchronous>, transform_indices = @transform_8, window_bounds = array<i64: 1, 80>}, {pipeline_mode = #tpu.pipeline_mode<synchronous>, transform_indices = @transform_9, window_bounds = array<i64: 80, 64>}, {pipeline_mode = #tpu.pipeline_mode<synchronous>, transform_indices = @transform_10, window_bounds = array<i64: 1, 64>}, {pipeline_mode = #tpu.pipeline_mode<synchronous>, transform_indices = @transform_11, window_bounds = array<i64: 64, 16>}, {pipeline_mode = #tpu.pipeline_mode<synchronous>, transform_indices = @transform_12, window_bounds = array<i64: 1, 16>}, {pipeline_mode = #tpu.pipeline_mode<synchronous>, transform_indices = @transform_13, window_bounds = array<i64: 16, 64>}, {pipeline_mode = #tpu.pipeline_mode<synchronous>, transform_indices = @transform_14, window_bounds = array<i64: 1, 64>}, {transform_indices = @transform_15, window_bounds = array<i64: 32, 64>}]} {
    %c0 = arith.constant 0 : index
    %c0_0 = arith.constant 0 : index
    %0 = vector.load %arg1[%c0, %c0_0] : memref<32x256xf32, #tpu.memory_space<vmem>>, vector<32x256xf32>
    %1 = arith.truncf %0 : vector<32x256xf32> to vector<32x256xbf16>
    %c0_1 = arith.constant 0 : index
    %c0_2 = arith.constant 0 : index
    %2 = vector.load %arg2[%c0_1, %c0_2] : memref<256x128xbf16, #tpu.memory_space<vmem>>, vector<256x128xbf16>
    %cst = arith.constant dense<0.000000e+00> : vector<32x128xf32>
    %3 = tpu.matmul %1, %2, %cst {dimension_numbers = #tpu.dot_dimension_numbers<[1], [0], [0], [1], [0, 0, 1, 1], [], []>} : vector<32x256xbf16>, vector<256x128xbf16>, vector<32x128xf32> -> vector<32x128xf32>
    %c0_3 = arith.constant 0 : index
    %c0_4 = arith.constant 0 : index
    %4 = vector.load %arg3[%c0_3, %c0_4] : memref<3x128xf32, #tpu.memory_space<vmem>>, vector<1x128xf32>
    %5 = vector.broadcast %4 : vector<1x128xf32> to vector<32x128xf32>
    %6 = arith.addf %3, %5 : vector<32x128xf32>
    %cst_5 = arith.constant 0.000000e+00 : f32
    %7 = vector.broadcast %cst_5 : f32 to vector<32x128xf32>
    %8 = arith.maximumf %6, %7 : vector<32x128xf32>
    %c1 = arith.constant 1 : index
    %c0_6 = arith.constant 0 : index
    %9 = vector.load %arg3[%c1, %c0_6] : memref<3x128xf32, #tpu.memory_space<vmem>>, vector<1x128xf32>
    %10 = vector.broadcast %9 : vector<1x128xf32> to vector<32x128xf32>
    %11 = arith.mulf %8, %10 : vector<32x128xf32>
    %c2 = arith.constant 2 : index
    %c0_7 = arith.constant 0 : index
    %12 = vector.load %arg3[%c2, %c0_7] : memref<3x128xf32, #tpu.memory_space<vmem>>, vector<1x128xf32>
    %13 = vector.broadcast %12 : vector<1x128xf32> to vector<32x128xf32>
    %14 = arith.addf %11, %13 : vector<32x128xf32>
    %15 = arith.truncf %14 : vector<32x128xf32> to vector<32x128xbf16>
    %c0_8 = arith.constant 0 : index
    %c0_9 = arith.constant 0 : index
    %16 = vector.load %arg4[%c0_8, %c0_9] : memref<128x64xbf16, #tpu.memory_space<vmem>>, vector<128x64xbf16>
    %cst_10 = arith.constant dense<0.000000e+00> : vector<32x64xf32>
    %17 = tpu.matmul %15, %16, %cst_10 {dimension_numbers = #tpu.dot_dimension_numbers<[1], [0], [0], [1], [0, 0, 1, 1], [], []>} : vector<32x128xbf16>, vector<128x64xbf16>, vector<32x64xf32> -> vector<32x64xf32>
    %c0_11 = arith.constant 0 : index
    %c0_12 = arith.constant 0 : index
    %18 = vector.load %arg5[%c0_11, %c0_12] : memref<3x64xf32, #tpu.memory_space<vmem>>, vector<1x64xf32>
    %19 = vector.broadcast %18 : vector<1x64xf32> to vector<32x64xf32>
    %20 = arith.addf %17, %19 : vector<32x64xf32>
    %cst_13 = arith.constant 0.000000e+00 : f32
    %21 = vector.broadcast %cst_13 : f32 to vector<32x64xf32>
    %22 = arith.maximumf %20, %21 : vector<32x64xf32>
    %c1_14 = arith.constant 1 : index
    %c0_15 = arith.constant 0 : index
    %23 = vector.load %arg5[%c1_14, %c0_15] : memref<3x64xf32, #tpu.memory_space<vmem>>, vector<1x64xf32>
    %24 = vector.broadcast %23 : vector<1x64xf32> to vector<32x64xf32>
    %25 = arith.mulf %22, %24 : vector<32x64xf32>
    %c2_16 = arith.constant 2 : index
    %c0_17 = arith.constant 0 : index
    %26 = vector.load %arg5[%c2_16, %c0_17] : memref<3x64xf32, #tpu.memory_space<vmem>>, vector<1x64xf32>
    %27 = vector.broadcast %26 : vector<1x64xf32> to vector<32x64xf32>
    %28 = arith.addf %25, %27 : vector<32x64xf32>
    %29 = arith.truncf %28 : vector<32x64xf32> to vector<32x64xbf16>
    %c0_18 = arith.constant 0 : index
    %c0_19 = arith.constant 0 : index
    %30 = vector.load %arg6[%c0_18, %c0_19] : memref<64x64xbf16, #tpu.memory_space<vmem>>, vector<64x64xbf16>
    %cst_20 = arith.constant dense<0.000000e+00> : vector<32x64xf32>
    %31 = tpu.matmul %29, %30, %cst_20 {dimension_numbers = #tpu.dot_dimension_numbers<[1], [0], [0], [1], [0, 0, 1, 1], [], []>} : vector<32x64xbf16>, vector<64x64xbf16>, vector<32x64xf32> -> vector<32x64xf32>
    %c0_21 = arith.constant 0 : index
    %c0_22 = arith.constant 0 : index
    %32 = vector.load %arg7[%c0_21, %c0_22] : memref<3x64xf32, #tpu.memory_space<vmem>>, vector<1x64xf32>
    %33 = vector.broadcast %32 : vector<1x64xf32> to vector<32x64xf32>
    %34 = arith.addf %31, %33 : vector<32x64xf32>
    %cst_23 = arith.constant 0.000000e+00 : f32
    %35 = vector.broadcast %cst_23 : f32 to vector<32x64xf32>
    %36 = arith.maximumf %34, %35 : vector<32x64xf32>
    %c1_24 = arith.constant 1 : index
    %c0_25 = arith.constant 0 : index
    %37 = vector.load %arg7[%c1_24, %c0_25] : memref<3x64xf32, #tpu.memory_space<vmem>>, vector<1x64xf32>
    %38 = vector.broadcast %37 : vector<1x64xf32> to vector<32x64xf32>
    %39 = arith.mulf %36, %38 : vector<32x64xf32>
    %c2_26 = arith.constant 2 : index
    %c0_27 = arith.constant 0 : index
    %40 = vector.load %arg7[%c2_26, %c0_27] : memref<3x64xf32, #tpu.memory_space<vmem>>, vector<1x64xf32>
    %41 = vector.broadcast %40 : vector<1x64xf32> to vector<32x64xf32>
    %42 = arith.addf %39, %41 : vector<32x64xf32>
    %43 = arith.truncf %42 : vector<32x64xf32> to vector<32x64xbf16>
    %c0_28 = arith.constant 0 : index
    %c0_29 = arith.constant 0 : index
    %44 = vector.load %arg8[%c0_28, %c0_29] : memref<64x80xbf16, #tpu.memory_space<vmem>>, vector<64x80xbf16>
    %cst_30 = arith.constant dense<0.000000e+00> : vector<32x80xf32>
    %45 = tpu.matmul %43, %44, %cst_30 {dimension_numbers = #tpu.dot_dimension_numbers<[1], [0], [0], [1], [0, 0, 1, 1], [], []>} : vector<32x64xbf16>, vector<64x80xbf16>, vector<32x80xf32> -> vector<32x80xf32>
    %c0_31 = arith.constant 0 : index
    %c0_32 = arith.constant 0 : index
    %46 = vector.load %arg9[%c0_31, %c0_32] : memref<1x80xf32, #tpu.memory_space<vmem>>, vector<1x80xf32>
    %47 = vector.broadcast %46 : vector<1x80xf32> to vector<32x80xf32>
    %48 = arith.addf %45, %47 : vector<32x80xf32>
    %cst_33 = arith.constant 0.000000e+00 : f32
    %49 = vector.broadcast %cst_33 : f32 to vector<32x80xf32>
    %50 = arith.maximumf %48, %49 : vector<32x80xf32>
    %51 = arith.truncf %50 : vector<32x80xf32> to vector<32x80xbf16>
    %c0_34 = arith.constant 0 : index
    %c0_35 = arith.constant 0 : index
    %52 = vector.load %arg10[%c0_34, %c0_35] : memref<80x64xbf16, #tpu.memory_space<vmem>>, vector<80x64xbf16>
    %cst_36 = arith.constant dense<0.000000e+00> : vector<32x64xf32>
    %53 = tpu.matmul %51, %52, %cst_36 {dimension_numbers = #tpu.dot_dimension_numbers<[1], [0], [0], [1], [0, 0, 1, 1], [], []>} : vector<32x80xbf16>, vector<80x64xbf16>, vector<32x64xf32> -> vector<32x64xf32>
    %c0_37 = arith.constant 0 : index
    %c0_38 = arith.constant 0 : index
    %54 = vector.load %arg11[%c0_37, %c0_38] : memref<1x64xf32, #tpu.memory_space<vmem>>, vector<1x64xf32>
    %55 = vector.broadcast %54 : vector<1x64xf32> to vector<32x64xf32>
    %56 = arith.addf %53, %55 : vector<32x64xf32>
    %57 = arith.negf %56 : vector<32x64xf32>
    %58 = math.exp %57 : vector<32x64xf32>
    %cst_39 = arith.constant 1.000000e+00 : f32
    %59 = vector.broadcast %cst_39 : f32 to vector<32x64xf32>
    %60 = arith.addf %59, %58 : vector<32x64xf32>
    %61 = arith.divf %59, %60 : vector<32x64xf32>
    %62 = arith.truncf %61 : vector<32x64xf32> to vector<32x64xbf16>
    %c0_40 = arith.constant 0 : index
    %c0_41 = arith.constant 0 : index
    %63 = vector.load %arg12[%c0_40, %c0_41] : memref<64x16xbf16, #tpu.memory_space<vmem>>, vector<64x16xbf16>
    %cst_42 = arith.constant dense<0.000000e+00> : vector<32x16xf32>
    %64 = tpu.matmul %62, %63, %cst_42 {dimension_numbers = #tpu.dot_dimension_numbers<[1], [0], [0], [1], [0, 0, 1, 1], [], []>} : vector<32x64xbf16>, vector<64x16xbf16>, vector<32x16xf32> -> vector<32x16xf32>
    %c0_43 = arith.constant 0 : index
    %c0_44 = arith.constant 0 : index
    %65 = vector.load %arg13[%c0_43, %c0_44] : memref<1x16xf32, #tpu.memory_space<vmem>>, vector<1x16xf32>
    %66 = vector.broadcast %65 : vector<1x16xf32> to vector<32x16xf32>
    %67 = arith.addf %64, %66 : vector<32x16xf32>
    %cst_45 = arith.constant 0.000000e+00 : f32
    %68 = vector.broadcast %cst_45 : f32 to vector<32x16xf32>
    %69 = arith.maximumf %67, %68 : vector<32x16xf32>
    %70 = arith.truncf %69 : vector<32x16xf32> to vector<32x16xbf16>
    %c0_46 = arith.constant 0 : index
    %c0_47 = arith.constant 0 : index
    %71 = vector.load %arg14[%c0_46, %c0_47] : memref<16x64xbf16, #tpu.memory_space<vmem>>, vector<16x64xbf16>
    %cst_48 = arith.constant dense<0.000000e+00> : vector<32x64xf32>
    %72 = tpu.matmul %70, %71, %cst_48 {dimension_numbers = #tpu.dot_dimension_numbers<[1], [0], [0], [1], [0, 0, 1, 1], [], []>} : vector<32x16xbf16>, vector<16x64xbf16>, vector<32x64xf32> -> vector<32x64xf32>
    %c0_49 = arith.constant 0 : index
    %c0_50 = arith.constant 0 : index
    %73 = vector.load %arg15[%c0_49, %c0_50] : memref<1x64xf32, #tpu.memory_space<vmem>>, vector<1x64xf32>
    %74 = vector.broadcast %73 : vector<1x64xf32> to vector<32x64xf32>
    %75 = arith.addf %72, %74 : vector<32x64xf32>
    %76 = arith.negf %75 : vector<32x64xf32>
    %77 = math.exp %76 : vector<32x64xf32>
    %cst_51 = arith.constant 1.000000e+00 : f32
    %78 = vector.broadcast %cst_51 : f32 to vector<32x64xf32>
    %79 = arith.addf %78, %77 : vector<32x64xf32>
    %80 = arith.divf %78, %79 : vector<32x64xf32>
    %81 = tpu.iota {dimensions = array<i32: 1>} : vector<32x64xi32>
    %c32_i32 = arith.constant 32 : i32
    %82 = vector.broadcast %c32_i32 : i32 to vector<32x64xi32>
    %83 = arith.cmpi slt, %81, %82 : vector<32x64xi32>
    %c37_i32 = arith.constant 37 : i32
    %84 = vector.broadcast %c37_i32 : i32 to vector<32x64xi32>
    %85 = arith.cmpi slt, %81, %84 : vector<32x64xi32>
    %c38_i32 = arith.constant 38 : i32
    %86 = vector.broadcast %c38_i32 : i32 to vector<32x64xi32>
    %87 = arith.cmpi slt, %81, %86 : vector<32x64xi32>
    %cst_52 = arith.constant 0.000000e+00 : f32
    %88 = vector.broadcast %cst_52 : f32 to vector<32x64xf32>
    %89 = arith.select %87, %80, %88 : vector<32x64xi1>, vector<32x64xf32>
    %90 = arith.select %85, %61, %89 : vector<32x64xi1>, vector<32x64xf32>
    %91 = arith.select %83, %42, %90 : vector<32x64xi1>, vector<32x64xf32>
    %c0_53 = arith.constant 0 : index
    %c0_54 = arith.constant 0 : index
    %92 = vector.load %arg16[%c0_53, %c0_54] : memref<32x64xf32, #tpu.memory_space<vmem>>, vector<32x64xf32>
    tpu.vector_store %arg16[%c0_53, %c0_54], %91 {strides = array<i32>} : memref<32x64xf32, #tpu.memory_space<vmem>>, vector<32x64xf32>,
    return
  }
  func.func @transform_0(%arg0: i32) -> (i32, i32) {
    %c0_i32 = arith.constant 0 : i32
    %c0_i32_0 = arith.constant 0 : i32
    return %arg0, %c0_i32 : i32, i32
  }
  func.func @transform_1(%arg0: i32) -> (i32, i32) {
    %c0_i32 = arith.constant 0 : i32
    %c0_i32_0 = arith.constant 0 : i32
    %c0_i32_1 = arith.constant 0 : i32
    return %c0_i32, %c0_i32_0 : i32, i32
  }
  func.func @transform_2(%arg0: i32) -> (i32, i32) {
    %c0_i32 = arith.constant 0 : i32
    %c0_i32_0 = arith.constant 0 : i32
    %c0_i32_1 = arith.constant 0 : i32
    return %c0_i32, %c0_i32_0 : i32, i32
  }
  func.func @transform_3(%arg0: i32) -> (i32, i32) {
    %c0_i32 = arith.constant 0 : i32
    %c0_i32_0 = arith.constant 0 : i32
    %c0_i32_1 = arith.constant 0 : i32
    return %c0_i32, %c0_i32_0 : i32, i32
  }
  func.func @transform_4(%arg0: i32) -> (i32, i32) {
    %c0_i32 = arith.constant 0 : i32
    %c0_i32_0 = arith.constant 0 : i32
    %c0_i32_1 = arith.constant 0 : i32
    return %c0_i32, %c0_i32_0 : i32, i32
  }
  func.func @transform_5(%arg0: i32) -> (i32, i32) {
    %c0_i32 = arith.constant 0 : i32
    %c0_i32_0 = arith.constant 0 : i32
    %c0_i32_1 = arith.constant 0 : i32
    return %c0_i32, %c0_i32_0 : i32, i32
  }
  func.func @transform_6(%arg0: i32) -> (i32, i32) {
    %c0_i32 = arith.constant 0 : i32
    %c0_i32_0 = arith.constant 0 : i32
    %c0_i32_1 = arith.constant 0 : i32
    return %c0_i32, %c0_i32_0 : i32, i32
  }
  func.func @transform_7(%arg0: i32) -> (i32, i32) {
    %c0_i32 = arith.constant 0 : i32
    %c0_i32_0 = arith.constant 0 : i32
    %c0_i32_1 = arith.constant 0 : i32
    return %c0_i32, %c0_i32_0 : i32, i32
  }
  func.func @transform_8(%arg0: i32) -> (i32, i32) {
    %c0_i32 = arith.constant 0 : i32
    %c0_i32_0 = arith.constant 0 : i32
    %c0_i32_1 = arith.constant 0 : i32
    return %c0_i32, %c0_i32_0 : i32, i32
  }
  func.func @transform_9(%arg0: i32) -> (i32, i32) {
    %c0_i32 = arith.constant 0 : i32
    %c0_i32_0 = arith.constant 0 : i32
    %c0_i32_1 = arith.constant 0 : i32
    return %c0_i32, %c0_i32_0 : i32, i32
  }
  func.func @transform_10(%arg0: i32) -> (i32, i32) {
    %c0_i32 = arith.constant 0 : i32
    %c0_i32_0 = arith.constant 0 : i32
    %c0_i32_1 = arith.constant 0 : i32
    return %c0_i32, %c0_i32_0 : i32, i32
  }
  func.func @transform_11(%arg0: i32) -> (i32, i32) {
    %c0_i32 = arith.constant 0 : i32
    %c0_i32_0 = arith.constant 0 : i32
    %c0_i32_1 = arith.constant 0 : i32
    return %c0_i32, %c0_i32_0 : i32, i32
  }
  func.func @transform_12(%arg0: i32) -> (i32, i32) {
    %c0_i32 = arith.constant 0 : i32
    %c0_i32_0 = arith.constant 0 : i32
    %c0_i32_1 = arith.constant 0 : i32
    return %c0_i32, %c0_i32_0 : i32, i32
  }
  func.func @transform_13(%arg0: i32) -> (i32, i32) {
    %c0_i32 = arith.constant 0 : i32
    %c0_i32_0 = arith.constant 0 : i32
    %c0_i32_1 = arith.constant 0 : i32
    return %c0_i32, %c0_i32_0 : i32, i32
  }
  func.func @transform_14(%arg0: i32) -> (i32, i32) {
    %c0_i32 = arith.constant 0 : i32
    %c0_i32_0 = arith.constant 0 : i32
    %c0_i32_1 = arith.constant 0 : i32
    return %c0_i32, %c0_i32_0 : i32, i32
  }
  func.func @transform_15(%arg0: i32) -> (i32, i32) {
    %c0_i32 = arith.constant 0 : i32
    %c0_i32_0 = arith.constant 0 : i32
    return %arg0, %c0_i32 : i32, i32
  }
}

</mosaic_0001>

<bundles_post_ra>
// kernel: tpu_custom_call.1
= control target key start
LH: loop header
LB: loop body
LE: loop exit
PB: predicated region body
PF: predicated region fallthrough
CT: control target
= control target key end

     0   :  { %s2708_s0 = inlined_call_operand.hbm [shape: f32[50,256], index: 0, kind: input, shape index: {}]   ;;  %s2709_s1 = inlined_call_operand.vmem [shape: bf16[256,128], index: 1, kind: input, shape index: {}]   ;;  %s2710_s2 = inlined_call_operand.vmem [shape: f32[3,128], index: 2, kind: input, shape index: {}]   ;;  %s2711_s3 = inlined_call_operand.vmem [shape: bf16[128,64], index: 3, kind: input, shape index: {}]   ;;  %s2712_s4 = inlined_call_operand.vmem [shape: f32[3,64], index: 4, kind: input, shape index: {}]   ;;  %s2713_s5 = inlined_call_operand.hbm [shape: bf16[64,64], index: 5, kind: input, shape index: {}]   ;;  %s2714_s6 = inlined_call_operand.hbm [shape: f32[3,64], index: 6, kind: input, shape index: {}]   ;;  %s2715_s7 = inlined_call_operand.hbm [shape: bf16[64,80], index: 7, kind: input, shape index: {}]   ;;  %s2716_s8 = inlined_call_operand.vmem [shape: f32[1,80], index: 8, kind: input, shape index: {}]   ;;  %s2717_s9 = inlined_call_operand.vmem [shape: bf16[80,64], index: 9, kind: input, shape index: {}]   ;;  %s2718_s10 = inlined_call_operand.vmem [shape: f32[1,64], index: 10, kind: input, shape index: {}]   ;;  %s2719_s11 = inlined_call_operand.vmem [shape: bf16[64,16], index: 11, kind: input, shape index: {}]   ;;  %s2720_s12 = inlined_call_operand.vmem [shape: f32[1,16], index: 12, kind: input, shape index: {}]   ;;  %s2721_s13 = inlined_call_operand.vmem [shape: bf16[16,64], index: 13, kind: input, shape index: {}]   ;;  %s2722_s14 = inlined_call_operand.hbm [shape: f32[1,64], index: 14, kind: input, shape index: {}]   ;;  %s2723_s15 = inlined_call_operand.hbm [shape: f32[50,64], index: 15, kind: output, shape index: {}]  }
   0x1   :  { %2733 = sst [smem:[#allocation21_spill]] %s2713_s5 }
   0x2   :  { %2734 = sst [smem:[#allocation22_spill]] %s2715_s7 }
   0x3   :  { %2735 = sst [smem:[#allocation23_spill]] %s2716_s8 }
   0x4   :  { %2736 = sst [smem:[#allocation24_spill]] %s2718_s10 }
   0x5   :  { %2737 = sst [smem:[#allocation25_spill]] %s2719_s11 }
   0x6   :  { %2738 = sst [smem:[#allocation26_spill]] %s2720_s12 }
   0x7   :  { %2739 = sst [smem:[#allocation27_spill]] %s2721_s13 }
   0x8   :  { %2740 = sst [smem:[#allocation28_spill]] %s2723_s15 }
   0x9   :  { %20 = vsyncpa [#allocation3], 0 }
   0xa   :  { %22 = vsyncpa [#allocation3 + $0x1], 0 }
   0xb   :  { %23 = vsyncpa [#allocation6], 0 }
   0xc   :  { %24 = vsyncpa [#allocation9], 0 }
   0xd   :  { %25 = vsyncpa [#allocation4], 0 }
   0xe   :  { %27 = vsyncpa [#allocation4 + $0x1], 0  ;;  %s2261_s18 = smov 0   ;;  %s2263_s19 = smov 0  }
   0xf   :  { %s2265_s20 = smov 0   ;;  %s2267_s21 = smov 0  }
  0x10 LB: > { %2741 = sst [smem:[#allocation16_spill]] %s2155_s18  ;;  %s2282_s22 = sadd.s32 4294967295, %s2167_s21   ;;  %s2167_s21 = sphi %s2267_s21, %s2773_s21   ;;  %s2163_s20 = sphi %s2265_s20, %s2777_s20   ;;  %s2159_s19 = sphi %s2263_s19, %s2776_s19   ;;  %s2155_s18 = sphi %s2261_s18, %s2775_s18  }
  0x11   : > { %s1528_s23 = sadd.s32 4294967294, %s2167_s21   ;;  %s2286_s24 = sadd.s32 1, %s2167_s21  }
  0x12   : > { %2742 = sst [smem:[#allocation17_spill]] %s2286_s24  ;;  %s40_s25 = sadd.s32 1, %s2163_s20 }
  0x13   : > { %s37_s26 = ssub.s32 %s2167_s21, %s2286_s24  ;;  %p47_p0 = scmp.ne.s32.totalorder %s2163_s20, %s2159_s19 }
  0x14   : > { %p38_p1 = scmp.eq.s32.totalorder %s37_s26, 0  ;;  %p48_p2 = scmp.eq.s32.totalorder %s2167_s21, 0 }
  0x15   : > { %p53_p3 = scmp.ne.s32.totalorder %s2159_s19, %s2155_s18  ;;  %p2732_p4 = scmp.eq.s32.totalorder %s2282_s22, 0 }
  0x16   : > { %s2298_s27 = scalar_select %p38_p1, %s2163_s20, %s40_s25  }
  0x17   : > { %p2300_p5 = por %p48_p2, %p47_p0  ;;  %p2306_p6 = por %p2732_p4, %p53_p3 }
  0x18   : > { %2743 = sst [smem:[#allocation18_spill]] %s2298_s27  ;;  %p371_p7 = scmp.eq.s32.totalorder %s2282_s22, 1 }
  0x19   : > { %p377_p8 = scmp.eq.s32.totalorder %s1528_s23, 1  ;;  %p1529_p9 = scmp.ge.s32.totalorder %s2167_s21, 1 }
  0x1a   : > { %p384_p10 = scmp.lt.s32.totalorder %s2167_s21, 3  ;;  %p2313_p11 = por %p371_p7, %p47_p0 }
  0x1b   : > { %p2317_p12 = por %p377_p8, %p53_p3  ;;  %s2751_s5 = sld [smem:[#allocation21_spill]] }
  0x1c   : > { %s2746_s30 = scalar_select %p2313_p11, 1, 0 }
  0x1d   : > { %s2748_s16 = scalar_select %p2317_p12, 1, 0 }
  0x1e   : > { %2747 = sst [smem:[#allocation19_spill]] %s2746_s30  ;;  %p2321_p13 = pnand %p1529_p9, %p384_p10 }
  0x1f   : > { %2749 = sst [smem:[#allocation20_spill]] %s2748_s16  ;;  %s2169_s23 = smov [#allocation5]  }
  0x20   : > { %p1810_p1 = pneg %p2321_p13  ;;  %s409_s24 = sshll.u32 %s2169_s23, 4  ;;  %s410_s24 = int_to_ptr.vmem [resolvable:$true] %s409_s24 }
  0x21   : > { %s407_s27 = sshll.u32 %s2751_s5, 4  ;;  %s2753_s7 = sld [smem:[#allocation22_spill]]  ;;  %s408_s27 = int_to_ptr.hbm [resolvable:$true] %s407_s27 }
  0x22   : > { %p2332_p0 = pnand %p1810_p1, %p2732_p4  ;;  %s2170_s26 = smov 64  }
  0x23   : > { %s2171_s5 = smov 4   ;;  %s422_s12 = sshll.u32 %s2714_s6, 4  ;;  %s423_s12 = int_to_ptr.hbm [resolvable:$true] %s422_s12 }
  0x24   : > { %1813 = dma.hbm_to_vmem [thread:$0]  (!%p2332_p0), %s408_s27, 512, %s410_s24, [#allocation6], %s2170_s26, %s2170_s26, %s2171_s5  }
  0x25   : > { %s2172_s13 = smov [#allocation8]   ;;  %s2173_s15 = smov [#allocation7]  }
  0x26   : > { %s435_s10 = sshll.u32 %s2172_s13, 4  ;;  %s424_s16 = sshll.u32 %s2173_s15, 4  ;;  %s436_s10 = int_to_ptr.vmem [resolvable:$true] %s435_s10  ;;  %s425_s16 = int_to_ptr.vmem [resolvable:$true] %s424_s16 }
  0x27   : > { %s433_s25 = sshll.u32 %s2753_s7, 4  ;;  %s466_s8 = sshll.u32 %s2722_s14, 4  ;;  %s434_s25 = int_to_ptr.hbm [resolvable:$true] %s433_s25  ;;  %s467_s8 = int_to_ptr.hbm [resolvable:$true] %s466_s8 }
  0x28   : > { %1819 = dma.hbm_to_vmem [thread:$0]  (!%p2332_p0), %s434_s25, 512, %s436_s10, [#allocation9], %s2170_s26, %s2170_s26, %s2171_s5  }
  0x29   : > { %1816 = dma.hbm_to_vmem [thread:$0]  (!%p2332_p0), %s423_s12, 64, %s425_s16, [#allocation6]  }
  0x2a   : > { %s2174_s24 = smov [#allocation10]   ;;  %p2731_p2 = scmp.ge.s32.totalorder %s2167_s21, 2 }
  0x2b   : > { %s468_s27 = sshll.u32 %s2174_s24, 4  ;;  %s469_s27 = int_to_ptr.vmem [resolvable:$true] %s468_s27 }
  0x2c   : > { %1822 = dma.hbm_to_vmem [thread:$0]  (!%p2332_p0), %s467_s8, 16, %s469_s27, [#allocation9]  }
  0x2d   : > { %475 = sbr.rel (%p2731_p2) target bundleno = 86 (0x56), region = 72 }
  0x32   : > { %478 = sbr.rel (!%p2300_p5) target bundleno = 86 (0x56), region = 76  ;;  %s479_s5 = sand.u32 (%p2300_p5), 1, %s2163_s20  }
  0x33   : > { %s1536_s7 = sshll.u32 (%p2300_p5), %s2167_s21, 2  ;;  %s1535_s10 = sshll.u32 (%p2300_p5), %s479_s5, 6 }
  0x34   : > { %s485_s11 = ssub.s32 (%p2300_p5), 7, %s1536_s7  ;;  %s2363_s18 = scalar_lea.sflag (%p2300_p5), [#allocation3], %s479_s5 }
  0x35   : > { %p486_p3 = scmp.lt.s32.totalorder (%p2300_p5), %s485_s11, 4  ;;  %s483_s30 = scalar_lea.vmem (%p2300_p5), [#allocation2], %s1535_s10 }
  0x37   : > { %s2779_s11 = smov (!%p486_p3, %s485_s11), 4 }
  0x38   : > { %s1746_s12 = sshll.u32 %s2779_s11, 4 }
  0x39   : > { %s490_s8 = ssub.s32 64, %s1746_s12 }
  0x3a   : > { %s491_s13 = sshll.u32 %s490_s8, 4 }
  0x3b   : > { %492 = vsyncadd %s2363_s18, %s491_s13  ;;  %p2366_p5 = scmp.ne.s32.totalorder %s1746_s12, 0  ;;  %s1748_s25 = sshll.u32 %s2167_s21, 6 }
  0x3c   : > { %s496_s15 = scalar_lea.hbm %s2708_s0, %s1748_s25  ;;  %s2374_s16 = sshll.u32 %s483_s30, 4  ;;  %s501_s16 = int_to_ptr.vmem [resolvable:$true] %s2374_s16 }
  0x3d   : > { %s498_s24 = sshll.u32 %s496_s15, 4  ;;  %s1543_s27 = sshll.u32 %s2779_s11, 8  ;;  %s2377_s24 = int_to_ptr.hbm [resolvable:$true] %s498_s24 }
  0x3e   : > { %s2043_s5 = sshra.s32 %s2377_s24, 4  ;;  %s2045_s7 = sshrl.u32 %s1543_s27, 4  ;;  %s2044_s5 = int_to_ptr.hbm [resolvable:$true] %s2043_s5 }
  0x3f   : > { %s2050_s10 = scalar_lea.hbm %s2044_s5, %s2045_s7  ;;  %s2054_s13 = scalar_lea.hbm %s2708_s0, 112 }
  0x40   : > { %p2051_p7 = scmp.ne.s32.totalorder %s2044_s5, %s2050_s10  ;;  %p2055_p10 = scmp.lt.s32.totalorder %s2044_s5, %s2708_s0 }
  0x41   : > { %p2056_p1 = scmp.lt.s32.totalorder %s2054_s13, %s2050_s10 }
  0x42   : > { %p2052_p8 = pnand %p2051_p7, %p2366_p5 }
  0x43   : > { %p2057_p0 = por %p2056_p1, %p2055_p10 }
  0x44   : > { %p2053_p9 = pneg %p2052_p8 }
  0x46   : > { %p2058_p3 = pnand %p2057_p0, %p2053_p9 }
  0x48   : > { %2061 = shalt.err (!%p2058_p3)
}
  0x49   : > { %s2062_s26 = sshra.s32 %s501_s16, 4  ;;  %s2175_s15 = smov [#allocation2]   ;;  %s2063_s26 = int_to_ptr.vmem [resolvable:$true] %s2062_s26 }
  0x4a   : > { %s2069_s23 = scalar_lea.vmem %s2063_s26, %s2045_s7  ;;  %s2073_s12 = scalar_lea.vmem %s2175_s15, 128 }
  0x4b   : > { %p2070_p7 = scmp.ne.s32.totalorder %s2063_s26, %s2069_s23  ;;  %p2075_p4 = scmp.lt.s32.totalorder %s2073_s12, %s2069_s23 }
  0x4d   : > { %p2071_p8 = pnand %p2070_p7, %p2366_p5 }
  0x4f   : > { %p2072_p2 = pneg %p2071_p8 }
  0x51   : > { %p2077_p12 = pnand %p2075_p4, %p2072_p2 }
  0x53   : > { %2080 = shalt.err (!%p2077_p12)
}
  0x54   : > { %s2176_s5 = smov 256   ;;  %s2177_s10 = smov 16  }
  0x55   : > { %506 = dma.hbm_to_vmem [thread:$0]  (%p2366_p5), %s2377_s24, %s1543_s27, %s501_s16, %s2363_s18, %s2176_s5, %s2176_s5, %s2177_s10  }
  0x56 PF: > { %512 = sbr.rel (%p2321_p13) target bundleno = 1249 (0x4e1), region = 80  ;;  %s2406_s7 = sand.u32 (!%p2321_p13), 1, %s2159_s19  }
  0x57   : > { %s1545_s8 = sshll.u32 (!%p2321_p13), %s2406_s7, 6  ;;  %s515_s13 = scalar_lea.sflag (!%p2321_p13), [#allocation3], %s2406_s7 }
  0x58   : > { %s2410_s30 = scalar_lea.vmem (!%p2321_p13), [#allocation2], %s1545_s8 }
  0x5b   : > { %2138 = dma.done.wait (%p2306_p6), %s515_s13, 1024  }
  0x5c   : > { %2140 = vsyncadd (%p2306_p6), %s515_s13, 4294966272  ;;  %p2755_p4 = scmp.eq.s32.totalorder %s2282_s22, 0 }
  0x5e   : > { %2142 = dma.done.wait (%p2755_p4), [#allocation6], 576   ;;  %p2756_p12 = pmov %p2755_p4 }
  0x5f   : > { %p2757_p13 = pmov %p2755_p4 }
  0x60   : > { %2144 = vsyncadd (%p2756_p12), [#allocation6], 4294966720 }
  0x61   : > { %2146 = dma.done.wait (%p2757_p13), [#allocation9], 528   ;;  %p2758_p2 = pmov %p2755_p4 }
  0x62   : > { %v1756_v0 = vld [vmem:[%s2709_s1 + $0x38] sm:$0xff]  ;;  %v1755_v2 = vld [vmem:[%s2709_s1 + $0x30] sm:$0xff]  ;;  %v1754_v4 = vld [vmem:[%s2709_s1 + $0x28] sm:$0xff]  ;;  %vm933_vm0 = vcmask 523264   ;;  %s2759_s18 = sld [smem:[#allocation23_spill]]  ;;  %vm1088_vm1 = vcmask 654336  }
  0x63   : > { %2148 = vsyncadd (%p2758_p2), [#allocation9], 4294966768  ;;  %v1764_v1 = vld [vmem:[%s2709_s1 + $0x78] sm:$0xff]  ;;  %740 = vmatpush.bf16.msra.mxu0 %v1756_v0  ;;  %v1763_v3 = vld [vmem:[%s2709_s1 + $0x70] sm:$0xff]  ;;  %s2760_s16 = sld [smem:[#allocation25_spill]]  ;;  %s1550_s28 = sshll.u32 %s2406_s7, 5 }
  0x64   : > { %759 = vmatpush.bf16.msra.mxu1 %v1764_v1  ;;  %v1762_v5 = vld [vmem:[%s2709_s1 + $0x68] sm:$0xff]  ;;  %v1753_v6 = vld [vmem:[%s2709_s1 + $0x20] sm:$0xff]  ;;  %v1752_v8 = vld [vmem:[%s2709_s1 + $0x18] sm:$0xff]  ;;  %s2762_s13 = sld [smem:[#allocation27_spill]]  ;;  %s2611_s29 = scalar_lea.vmem [#allocation11], %s1550_s28 }
  0x65   : > { %v1761_v7 = vld [vmem:[%s2709_s1 + $0x60] sm:$0xff]  ;;  %v1760_v9 = vld [vmem:[%s2709_s1 + $0x58] sm:$0xff]  ;;  %v1751_v11 = vld [vmem:[%s2709_s1 + $0x10] sm:$0xff]  ;;  %s1395_s24 = scalar_lea.sflag [#allocation4], %s2406_s7  ;;  %s1738_s25 = sshll.u32 (%p2313_p11), %s2282_s22, 2 }
  0x66   : > { %v1772_v10 = vld [vmem:[%s2711_s3 + $0x38] sm:$0xff]  ;;  %v1759_v12 = vld [vmem:[%s2709_s1 + $0x50] sm:$0xff]  ;;  %v1750_v14 = vld [vmem:[%s2709_s1 + $0x8] sm:$0xff]  ;;  %s1403_s26 = ssub.s32 (%p2313_p11), 7, %s1738_s25 }
  0x67   : > { %741 = vmatpush.bf16.msra.mxu0 %v1755_v2  ;;  %862 = vmatpush.bf16.msra.mxu2 %v1772_v10  ;;  %v1771_v13 = vld [vmem:[%s2711_s3 + $0x30] sm:$0xff]  ;;  %v1758_v15 = vld [vmem:[%s2709_s1 + $0x48] sm:$0xff]  ;;  %v1749_v17 = vld [vmem:[%s2709_s1] sm:$0xff]  ;;  %p1404_p6 = scmp.lt.s32.totalorder (%p2313_p11), %s1403_s26, 4 }
  0x68   : > { %760 = vmatpush.bf16.msra.mxu1 %v1763_v3  ;;  %v1770_v16 = vld [vmem:[%s2711_s3 + $0x28] sm:$0xff]  ;;  %v1757_v18 = vld [vmem:[%s2709_s1 + $0x40] sm:$0xff]  ;;  %v600_v20 = vld [vmem:[%s2410_s30 + $0x10] sm:$0xff] }
  0x69   : > { %v598_v19 = vld [vmem:[%s2410_s30] sm:$0xff]  ;;  %v599_v21 = vld [vmem:[%s2410_s30 + $0x8] sm:$0xff]  ;;  %v601_v22 = vld [vmem:[%s2410_s30 + $0x18] sm:$0xff] }
  0x6a   : > { %v606_v23 = vpack.c.bf16 %v600_v20, %v598_v19  ;;  %v607_v24 = vpack.c.bf16 %v601_v22, %v599_v21  ;;  %v602_v25 = vld [vmem:[%s2410_s30 + $0x20] sm:$0xff]  ;;  %v604_v26 = vld [vmem:[%s2410_s30 + $0x30] sm:$0xff]  ;;  %v603_v27 = vld [vmem:[%s2410_s30 + $0x28] sm:$0xff] }
  0x6b   : > { %742 = vmatpush.bf16.msra.mxu0 %v1754_v4  ;;  %863 = vmatpush.bf16.msra.mxu2 %v1771_v13  ;;  %v605_v28 = vld [vmem:[%s2410_s30 + $0x38] sm:$0xff]  ;;  %v608_v29 = vpack.c.bf16 %v604_v26, %v602_v25  ;;  %v1769_v31 = vld [vmem:[%s2711_s3 + $0x20] sm:$0xff]  ;;  %v1767_v33 = vld [vmem:[%s2711_s3 + $0x10] sm:$0xff]  ;;  %s2761_s30 = sld [smem:[#allocation24_spill]] }
  0x6c   : > { %761 = vmatpush.bf16.msra.mxu1 %v1762_v5  ;;  %v609_v30 = vpack.c.bf16 %v605_v28, %v603_v27  ;;  %v1768_v32 = vld [vmem:[%s2711_s3 + $0x18] sm:$0xff]  ;;  %v1766_v34 = vld [vmem:[%s2711_s3 + $0x8] sm:$0xff]  ;;  %v1765_v35 = vld [vmem:[%s2711_s3] sm:$0xff] }
  0x6d   : > { %v1878_v36 = vld [vmem:[%s2710_s2] ss:$0 sm:$0xff]  ;;  %v1879_v44 = vld [vmem:[%s2710_s2 + $0x1] ss:$0 sm:$0xff]  ;;  %v1880_v49 = vld [vmem:[%s2710_s2 + $0x2] ss:$0 sm:$0xff] }
  0x6e   : > { %v1776_v5 = vld [vmem:[#allocation5 + $0x18] sm:$0xff]  ;;  %v1883_v19 = vld [vmem:[%s2712_s4 + $0x2] ss:$0 sm:$0xff] }
  0x6f   : > { %743 = vmatpush.bf16.msra.mxu0 %v1753_v6  ;;  %864 = vmatpush.bf16.msra.mxu2 %v1770_v16  ;;  %v1775_v6 = vld [vmem:[#allocation5 + $0x10] sm:$0xff] }
  0x70   : > { %762 = vmatpush.bf16.msra.mxu1 %v1761_v7  ;;  %944 = vmatpush.bf16.msra.mxu3 %v1776_v5  ;;  %v1774_v7 = vld [vmem:[#allocation5 + $0x8] sm:$0xff]  ;;  %v1779_v13 = vld [vmem:[#allocation8 + $0x10] sm:$0xff]  ;;  %v1887_v5 = vld [vmem:[%s2759_s18] ss:$0 sm:$0xff]  ;;  %s2765_s18 = sld [smem:[#allocation26_spill]] }
  0x73   : > { %744 = vmatpush.bf16.msra.mxu0 %v1752_v8  ;;  %865 = vmatpush.bf16.msra.mxu2 %v1769_v31  ;;  %v1773_v8 = vld [vmem:[#allocation5] sm:$0xff] }
  0x74   : > { %763 = vmatpush.bf16.msra.mxu1 %v1760_v9  ;;  %945 = vmatpush.bf16.msra.mxu3 %v1775_v6  ;;  %v1881_v9 = vld [vmem:[%s2712_s4] ss:$0 sm:$0xff] }
  0x77   : > { %745 = vmatpush.bf16.msra.mxu0 %v1751_v11  ;;  %866 = vmatpush.bf16.msra.mxu2 %v1768_v32 }
  0x78   : > { %764 = vmatpush.bf16.msra.mxu1 %v1759_v12  ;;  %946 = vmatpush.bf16.msra.mxu3 %v1774_v7  ;;  %v1780_v12 = vld [vmem:[#allocation8 + $0x18] sm:$0xff] }
  0x7b   : > { %746 = vmatpush.bf16.msra.mxu0 %v1750_v14  ;;  %867 = vmatpush.bf16.msra.mxu2 %v1767_v33 }
  0x7c   : > { %765 = vmatpush.bf16.msra.mxu1 %v1758_v15  ;;  %947 = vmatpush.bf16.msra.mxu3 %v1773_v8  ;;  %v1882_v15 = vld [vmem:[%s2712_s4 + $0x1] ss:$0 sm:$0xff] }
  0x7f   : > { %747 = vmatpush.bf16.msra.mxu0 %v1749_v17  ;;  %868 = vmatpush.bf16.msra.mxu2 %v1766_v34 }
  0x80   : > { %766 = vmatpush.bf16.msra.mxu1 %v1757_v18  ;;  %1023 = vmatpush.bf16.msrb.mxu3 %v1780_v12 }
  0x82   : > { %748 = vmatmul.bf16.vlgmr.msra.gmra.mxu0 %v606_v23 }
  0x83   : > { %767 = vmatmul.bf16.vlgmr.msra.gmra.mxu1 %v607_v24  ;;  %869 = vmatpush.bf16.msra.mxu2 %v1765_v35 }
  0x84   : > { %1024 = vmatpush.bf16.msrb.mxu3 %v1779_v13 }
  0x92   : > { %753 = vmatmul.bf16.gmra.mxu0 %v608_v29 }
  0x93   : > { %772 = vmatmul.bf16.gmra.mxu1 %v609_v30 }
  0xff   : > { %v749_v37 = vpop.f32.mrf.mxu0 }
 0x100   : > { %v768_v38 = vpop.f32.mrf.mxu1  ;;  %v750_v39 = vadd.f32 %v1878_v36, %v749_v37  ;;  %v1777_v37 = vld [vmem:[#allocation8] sm:$0xff] }
 0x102   : > { %v769_v40 = vadd.f32 %v768_v38, %v750_v39  ;;  %v1884_v38 = vld [vmem:[#allocation7] ss:$0 sm:$0xff] }
 0x104   : > { %v778_v43 = vmax.f32 %v769_v40, 0.0 }
 0x106   : > { %v784_v47 = vmul.f32 %v1879_v44, %v778_v43 }
 0x107   : > { %v751_v41 = vpop.f32.mrf.mxu0 }
 0x108   : > { %v770_v42 = vpop.f32.mrf.mxu1  ;;  %v752_v45 = vadd.f32 %v1878_v36, %v751_v41  ;;  %v790_v54 = vadd.f32 %v1880_v49, %v784_v47  ;;  %v1785_v41 = vld [vmem:[%s2717_s9 + $0x20] sm:$0xff]  ;;  %v1783_v47 = vld [vmem:[%s2717_s9 + $0x10] sm:$0xff] }
 0x109   : > { %1098 = vmatpush.bf16.msrb.mxu0 %v1785_v41 }
 0x10a   : > { %v771_v46 = vadd.f32 %v770_v42, %v752_v45  ;;  %v1784_v42 = vld [vmem:[%s2717_s9 + $0x18] sm:$0xff] }
 0x10c   : > { %v779_v48 = vmax.f32 %v771_v46, 0.0 }
 0x10d   : > { %1099 = vmatpush.bf16.msrb.mxu0 %v1784_v42  ;;  %v1790_v42 = vld [vmem:[%s2762_s13] sm:$0xff] }
 0x10e   : > { %v785_v50 = vmul.f32 %v1879_v44, %v779_v48  ;;  %1285 = vmatpush.bf16.msrb.mxu2 %v1790_v42 }
 0x10f   : > { %v754_v51 = vpop.f32.mrf.mxu0 }
 0x110   : > { %v773_v52 = vpop.f32.mrf.mxu1  ;;  %v755_v53 = vadd.f32 %v1878_v36, %v754_v51  ;;  %v791_v55 = vadd.f32 %v1880_v49, %v785_v50 }
 0x111   : > { %1100 = vmatpush.bf16.msrb.mxu0 %v1783_v47 }
 0x112   : > { %v794_v56 = vpack.c.bf16 %v791_v55, %v790_v54  ;;  %v774_v57 = vadd.f32 %v773_v52, %v755_v53 }
 0x114   : > { %870 = vmatmul.bf16.vlgmr.msra.gmra.mxu2 %v794_v56  ;;  %v780_v59 = vmax.f32 %v774_v57, 0.0 }
 0x116   : > { %v786_v63 = vmul.f32 %v1879_v44, %v780_v59 }
 0x117   : > { %v756_v58 = vpop.f32.mrf.mxu0 }
 0x118   : > { %v757_v60 = vadd.f32 %v1878_v36, %v756_v58  ;;  %v775_v61 = vpop.f32.mrf.mxu1  ;;  %v792_v2 = vadd.f32 %v1880_v49, %v786_v63  ;;  %v1778_v36 = vld [vmem:[#allocation8 + $0x8] sm:$0xff] }
 0x119   : > { %1025 = vmatpush.bf16.msrb.mxu3 %v1778_v36 }
 0x11a   : > { %v776_v62 = vadd.f32 %v775_v61, %v757_v60 }
 0x11c   : > { %v781_v0 = vmax.f32 %v776_v62, 0.0 }
 0x11d   : > { %1026 = vmatpush.bf16.msrb.mxu3 %v1777_v37 }
 0x11e   : > { %v787_v1 = vmul.f32 %v1879_v44, %v781_v0  ;;  %v1885_v44 = vld [vmem:[#allocation7 + $0x1] ss:$0 sm:$0xff] }
 0x120   : > { %v793_v3 = vadd.f32 %v1880_v49, %v787_v1  ;;  %v1886_v49 = vld [vmem:[#allocation7 + $0x2] ss:$0 sm:$0xff] }
 0x122   : > { %v795_v4 = vpack.c.bf16 %v793_v3, %v792_v2  ;;  %v1782_v2 = vld [vmem:[%s2717_s9 + $0x8] sm:$0xff]  ;;  %v1781_v3 = vld [vmem:[%s2717_s9] sm:$0xff] }
 0x123   : > { %1101 = vmatpush.bf16.msrb.mxu0 %v1782_v2 }
 0x124   : > { %875 = vmatmul.bf16.gmra.mxu2 %v795_v4 }
 0x127   : > { %1102 = vmatpush.bf16.msrb.mxu0 %v1781_v3 }
 0x197   : > { %v871_v10 = vpop.f32.mrf.mxu2 }
 0x198   : > { %v872_v11 = vadd.f32 %v1881_v9, %v871_v10 }
 0x19a   : > { %v881_v14 = vmax.f32 %v872_v11, 0.0 }
 0x19c   : > { %v887_v18 = vmul.f32 %v1882_v15, %v881_v14 }
 0x19e   : > { %v893_v22 = vadd.f32 %v1883_v19, %v887_v18 }
 0x19f   : > { %v873_v16 = vpop.f32.mrf.mxu2 }
 0x1a0   : > { %v874_v17 = vadd.f32 %v1881_v9, %v873_v16 }
 0x1a2   : > { %v882_v20 = vmax.f32 %v874_v17, 0.0 }
 0x1a4   : > { %v888_v21 = vmul.f32 %v1882_v15, %v882_v20  ;;  %v1788_v20 = vld [vmem:[%s2760_s16 + $0x10] sm:$0xff] }
 0x1a6   : > { %v894_v23 = vadd.f32 %v1883_v19, %v888_v21  ;;  %v1888_v21 = vld [vmem:[%s2761_s30] ss:$0 sm:$0xff] }
 0x1a7   : > { %v876_v24 = vpop.f32.mrf.mxu2 }
 0x1a8   : > { %v897_v25 = vpack.c.bf16 %v894_v23, %v893_v22  ;;  %v877_v26 = vadd.f32 %v1881_v9, %v876_v24  ;;  %v1787_v23 = vld [vmem:[%s2760_s16 + $0x8] sm:$0xff] }
 0x1aa   : > { %1663 = vmatmul.msk.bf16.vlgmr.msra.gmra.mxu3 %vm933_vm0, %v897_v25  ;;  %v883_v27 = vmax.f32 %v877_v26, 0.0  ;;  %v1786_v26 = vld [vmem:[%s2760_s16] sm:$0xff] }
 0x1ac   : > { %v889_v30 = vmul.f32 %v1882_v15, %v883_v27 }
 0x1ae   : > { %v895_v33 = vadd.f32 %v1883_v19, %v889_v30 }
 0x1af   : > { %v878_v28 = vpop.f32.mrf.mxu2 }
 0x1b0   : > { %v879_v29 = vadd.f32 %v1881_v9, %v878_v28 }
 0x1b2   : > { %v884_v31 = vmax.f32 %v879_v29, 0.0 }
 0x1b4   : > { %v890_v32 = vmul.f32 %v1882_v15, %v884_v31 }
 0x1b6   : > { %v896_v34 = vadd.f32 %v1883_v19, %v890_v32  ;;  %v1789_v19 = vld [vmem:[%s2760_s16 + $0x18] sm:$0xff] }
 0x1b7   : > { %1238 = vmatpush.bf16.msrb.mxu1 %v1789_v19 }
 0x1b8   : > { %v898_v35 = vpack.c.bf16 %v896_v34, %v895_v33 }
 0x1ba   : > { %1664 = vmatmul.msk.bf16.gmra.mxu3 %vm933_vm0, %v898_v35 }
 0x1bb   : > { %1239 = vmatpush.bf16.msrb.mxu1 %v1788_v20 }
 0x1bf   : > { %1240 = vmatpush.bf16.msrb.mxu1 %v1787_v23 }
 0x1c3   : > { %1241 = vmatpush.bf16.msrb.mxu1 %v1786_v26 }
 0x22d   : > { %v949_v39 = vpop.f32.mrf.mxu3 }
 0x22e   : > { %v950_v40 = vadd.f32 %v1884_v38, %v949_v39 }
 0x230   : > { %v959_v43 = vmax.f32 %v950_v40, 0.0 }
 0x232   : > { %v965_v48 = vmul.f32 %v1885_v44, %v959_v43 }
 0x234   : > { %v2533_v52 = vadd.f32 %v1886_v49, %v965_v48 }
 0x235   : > { %v951_v45 = vpop.f32.mrf.mxu3 }
 0x236   : > { %v952_v46 = vadd.f32 %v1884_v38, %v951_v45 }
 0x238   : > { %v960_v50 = vmax.f32 %v952_v46, 0.0 }
 0x23a   : > { %v966_v51 = vmul.f32 %v1885_v44, %v960_v50 }
 0x23c   : > { %v2535_v53 = vadd.f32 %v1886_v49, %v966_v51 }
 0x23d   : > { %v954_v54 = vpop.f32.mrf.mxu3 }
 0x23e   : > { %v975_v55 = vpack.c.bf16 %v2535_v53, %v2533_v52  ;;  %v955_v56 = vadd.f32 %v1884_v38, %v954_v54 }
 0x240   : > { %1681 = vmatmul.msk.bf16.vlgmr.msrb.gmra.mxu3 %vm933_vm0, %v975_v55  ;;  %v961_v57 = vmax.f32 %v955_v56, 0.0 }
 0x242   : > { %v967_v60 = vmul.f32 %v1885_v44, %v961_v57 }
 0x244   : > { %v2540_v63 = vadd.f32 %v1886_v49, %v967_v60 }
 0x245   : > { %v956_v58 = vpop.f32.mrf.mxu3 }
 0x246   : > { %v957_v59 = vadd.f32 %v1884_v38, %v956_v58 }
 0x248   : > { %v962_v61 = vmax.f32 %v957_v59, 0.0 }
 0x24a   : > { %v968_v62 = vmul.f32 %v1885_v44, %v962_v61 }
 0x24c   : > { %v2542_v0 = vadd.f32 %v1886_v49, %v968_v62 }
 0x24e   : > { %v976_v1 = vpack.c.bf16 %v2542_v0, %v2540_v63 }
 0x250   : > { %1682 = vmatmul.msk.bf16.gmra.mxu3 %vm933_vm0, %v976_v1 }
 0x2c3   : > { %v1028_v4 = vpop.f32.mrf.mxu3 }
 0x2c4   : > { %v1029_v6 = vadd.f32 %v1887_v5, %v1028_v4 }
 0x2c6   : > { %v1038_v9 = vmax.f32 %v1029_v6, 0.0 }
 0x2cb   : > { %v1030_v7 = vpop.f32.mrf.mxu3 }
 0x2cc   : > { %v1031_v8 = vadd.f32 %v1887_v5, %v1030_v7 }
 0x2ce   : > { %v1039_v10 = vmax.f32 %v1031_v8, 0.0 }
 0x2d0   : > { %v1042_v11 = vpack.c.bf16 %v1039_v10, %v1038_v9 }
 0x2d2   : > { %1703 = vmatmul.msk.bf16.vlgmr.msrb.gmra.mxu0 %vm1088_vm1, %v1042_v11 }
 0x2d3   : > { %v1033_v12 = vpop.f32.mrf.mxu3 }
 0x2d4   : > { %v1034_v13 = vadd.f32 %v1887_v5, %v1033_v12 }
 0x2d6   : > { %v1040_v16 = vmax.f32 %v1034_v13, 0.0 }
 0x2db   : > { %v1035_v14 = vpop.f32.mrf.mxu3 }
 0x2dc   : > { %v1036_v15 = vadd.f32 %v1887_v5, %v1035_v14 }
 0x2de   : > { %v1041_v17 = vmax.f32 %v1036_v15, 0.0 }
 0x2e0   : > { %v1043_v18 = vpack.c.bf16 %v1041_v17, %v1040_v16 }
 0x2e2   : > { %1704 = vmatmul.msk.bf16.gmra.mxu0 %vm1088_vm1, %v1043_v18 }
 0x34f   : > { %v1104_v22 = vpop.f32.mrf.mxu0 }
 0x350   : > { %v1105_v24 = vadd.f32 %v1888_v21, %v1104_v22 }
 0x352   : > { %v1705_v25 = vmul.f32 -1.442695, %v1105_v24 }
 0x354   : > { %1891 = vpow2.f32 %v1705_v25 }
 0x357   : > { %v1106_v27 = vpop.f32.mrf.mxu0 }
 0x358   : > { %v1107_v28 = vadd.f32 %v1888_v21, %v1106_v27 }
 0x35a   : > { %v1892_v29 = vpop.eup %1891  ;;  %v1706_v30 = vmul.f32 -1.442695, %v1107_v28 }
 0x35b   : > { %v1126_v31 = vadd.f32 1.0, %v1892_v29  ;;  %v1889_v29 = vld [vmem:[%s2765_s18] ss:$0 sm:$0xff] }
 0x35c   : > { %1893 = vpow2.f32 %v1706_v30 }
 0x35d   : > { %1895 = vrcp.f32 %v1126_v31  ;;  %vm1135_vm3 = vweird.f32 %v1126_v31  ;;  %v1141_v51 = vand.u32 2147483648, %v1126_v31  ;;  %v1139_v55 = vand.u32 2147483647, %v1126_v31 }
 0x35f   : > { %v1109_v32 = vpop.f32.mrf.mxu0  ;;  %v1142_v2 = vor.u32 1.1754944e-38, %v1141_v51  ;;  %vm1140_vm8 = vcmp.eq.f32.partialorder %v1139_v55, 8.507059e+37 }
 0x360   : > { %v1110_v33 = vadd.f32 %v1888_v21, %v1109_v32 }
 0x362   : > { %v1894_v34 = vpop.eup %1893  ;;  %v1707_v35 = vmul.f32 -1.442695, %v1110_v33 }
 0x363   : > { %v1896_v36 = vpop.eup %1895  ;;  %v1127_v37 = vadd.f32 1.0, %v1894_v34 }
 0x364   : > { %v1131_v38 = vmul.f32 %v1896_v36, %v1126_v31  ;;  %1897 = vpow2.f32 %v1707_v35  ;;  %vm1136_vm2 = vweird.f32 %v1896_v36 }
 0x365   : > { %1899 = vrcp.f32 %v1127_v37  ;;  %v1156_v54 = vand.u32 2147483648, %v1127_v37  ;;  %v1154_v57 = vand.u32 2147483647, %v1127_v37  ;;  %vm2574_vm5 = vmor %vm1135_vm3, %vm1136_vm2  ;;  %vm1150_vm6 = vweird.f32 %v1127_v37 }
 0x366   : > { %v1132_v39 = vsub.f32 1.0, %v1131_v38  ;;  %vm1271_vm3 = vcmask 130048  }
 0x367   : > { %v1111_v40 = vpop.f32.mrf.mxu0  ;;  %v1157_v3 = vor.u32 1.1754944e-38, %v1156_v54  ;;  %vm1155_vm9 = vcmp.eq.f32.partialorder %v1154_v57, 8.507059e+37 }
 0x368   : > { %v1112_v41 = vadd.f32 %v1888_v21, %v1111_v40  ;;  %v1133_v45 = vmul.f32 %v1896_v36, %v1132_v39 }
 0x36a   : > { %v1898_v43 = vpop.eup %1897  ;;  %v1708_v44 = vmul.f32 -1.442695, %v1112_v41  ;;  %v1134_v50 = vadd.f32 %v1896_v36, %v1133_v45 }
 0x36b   : > { %v1900_v46 = vpop.eup %1899  ;;  %v1128_v47 = vadd.f32 1.0, %v1898_v43  ;;  %v1890_v43 = vld [vmem:[#allocation10] ss:$0 sm:$0xff] }
 0x36c   : > { %v1146_v48 = vmul.f32 %v1900_v46, %v1127_v37  ;;  %1901 = vpow2.f32 %v1708_v44  ;;  %vm1151_vm4 = vweird.f32 %v1900_v46  ;;  %v1138_v60 = vsel %vm2574_vm5, %v1896_v36, %v1134_v50 }
 0x36d   : > { %1903 = vrcp.f32 %v1128_v47  ;;  %vm1152_vm7 = vmor %vm1150_vm6, %vm1151_vm4  ;;  %v2580_v6 = vsel %vm1140_vm8, %v1142_v2, %v1138_v60  ;;  %vm1165_vm11 = vweird.f32 %v1128_v47  ;;  %v1171_v15 = vand.u32 2147483648, %v1128_v47 }
 0x36e   : > { %v1147_v49 = vsub.f32 1.0, %v1146_v48  ;;  %v1169_v17 = vand.u32 2147483647, %v1128_v47 }
 0x36f   : > { %v1172_v22 = vor.u32 1.1754944e-38, %v1171_v15 }
 0x370   : > { %v1148_v56 = vmul.f32 %v1900_v46, %v1147_v49  ;;  %vm1170_vm1 = vcmp.eq.f32.partialorder %v1169_v17, 8.507059e+37 }
 0x372   : > { %v1902_v59 = vpop.eup %1901  ;;  %v1149_v61 = vadd.f32 %v1900_v46, %v1148_v56 }
 0x373   : > { %v1904_v62 = vpop.eup %1903  ;;  %v1129_v1 = vadd.f32 1.0, %v1902_v59  ;;  %v1373_v59 = vlaneseq }
 0x374   : > { %v1161_v4 = vmul.f32 %v1904_v62, %v1128_v47  ;;  %v1153_v5 = vsel %vm1152_vm7, %v1900_v46, %v1149_v61  ;;  %vm1166_vm10 = vweird.f32 %v1904_v62 }
 0x375   : > { %1905 = vrcp.f32 %v1129_v1  ;;  %v2582_v7 = vsel %vm1155_vm9, %v1157_v3, %v1153_v5  ;;  %v1186_v16 = vand.u32 2147483648, %v1129_v1  ;;  %v1184_v19 = vand.u32 2147483647, %v1129_v1  ;;  %vm1167_vm13 = vmor %vm1165_vm11, %vm1166_vm10 }
 0x376   : > { %v1190_v8 = vpack.c.bf16 %v2582_v7, %v2580_v6  ;;  %v1162_v9 = vsub.f32 1.0, %v1161_v4  ;;  %vm1180_vm14 = vweird.f32 %v1129_v1  ;;  %v2597_v2 = vand.u32 127, %v1373_v59 }
 0x377   : > { %v1187_v23 = vor.u32 1.1754944e-38, %v1186_v16  ;;  %vm1185_vm2 = vcmp.eq.f32.partialorder %v1184_v19, 8.507059e+37 }
 0x378   : > { %1725 = vmatmul.msk.bf16.vlgmr.msrb.gmra.mxu1 %vm933_vm0, %v1190_v8  ;;  %v1163_v10 = vmul.f32 %v1904_v62, %v1162_v9  ;;  %vm1376_vm7 = vcmp.lt.s32.totalorder %v2597_v2, 37  ;;  %vm1377_vm8 = vcmp.lt.s32.totalorder %v2597_v2, 38  ;;  %vm1375_vm10 = vcmp.lt.s32.totalorder %v2597_v2, 32 }
 0x37a   : > { %v1164_v13 = vadd.f32 %v1904_v62, %v1163_v10 }
 0x37b   : > { %v1906_v11 = vpop.eup %1905 }
 0x37c   : > { %v1176_v12 = vmul.f32 %v1906_v11, %v1129_v1  ;;  %vm1181_vm12 = vweird.f32 %v1906_v11  ;;  %v1168_v20 = vsel %vm1167_vm13, %v1904_v62, %v1164_v13 }
 0x37d   : > { %vm1182_vm15 = vmor %vm1180_vm14, %vm1181_vm12  ;;  %v2587_v25 = vsel %vm1170_vm1, %v1172_v22, %v1168_v20 }
 0x37e   : > { %v1177_v14 = vsub.f32 1.0, %v1176_v12 }
 0x380   : > { %v1178_v18 = vmul.f32 %v1906_v11, %v1177_v14 }
 0x382   : > { %v1179_v21 = vadd.f32 %v1906_v11, %v1178_v18 }
 0x384   : > { %v1183_v24 = vsel %vm1182_vm15, %v1906_v11, %v1179_v21 }
 0x385   : > { %v2589_v26 = vsel %vm1185_vm2, %v1187_v23, %v1183_v24 }
 0x386   : > { %v1191_v27 = vpack.c.bf16 %v2589_v26, %v2587_v25 }
 0x388   : > { %1726 = vmatmul.msk.bf16.gmra.mxu1 %vm933_vm0, %v1191_v27 }
 0x3f5   : > { %v1243_v28 = vpop.f32.mrf.mxu1 }
 0x3f6   : > { %v1244_v30 = vadd.f32 %v1889_v29, %v1243_v28 }
 0x3f8   : > { %v1253_v33 = vmax.f32 %v1244_v30, 0.0 }
 0x3fd   : > { %v1245_v31 = vpop.f32.mrf.mxu1 }
 0x3fe   : > { %v1246_v32 = vadd.f32 %v1889_v29, %v1245_v31 }
 0x400   : > { %v1254_v34 = vmax.f32 %v1246_v32, 0.0 }
 0x402   : > { %v1257_v35 = vpack.c.bf16 %v1254_v34, %v1253_v33 }
 0x404   : > { %1731 = vmatmul.msk.bf16.vlgmr.msrb.gmra.mxu2 %vm1271_vm3, %v1257_v35 }
 0x405   : > { %v1248_v36 = vpop.f32.mrf.mxu1 }
 0x406   : > { %v1249_v37 = vadd.f32 %v1889_v29, %v1248_v36 }
 0x408   : > { %v1255_v40 = vmax.f32 %v1249_v37, 0.0 }
 0x40d   : > { %v1250_v38 = vpop.f32.mrf.mxu1 }
 0x40e   : > { %v1251_v39 = vadd.f32 %v1889_v29, %v1250_v38 }
 0x410   : > { %v1256_v41 = vmax.f32 %v1251_v39, 0.0 }
 0x412   : > { %v1258_v42 = vpack.c.bf16 %v1256_v41, %v1255_v40 }
 0x414   : > { %1732 = vmatmul.msk.bf16.gmra.mxu2 %vm1271_vm3, %v1258_v42 }
 0x487   : > { %v1287_v44 = vpop.f32.mrf.mxu2 }
 0x488   : > { %v1288_v45 = vadd.f32 %v1890_v43, %v1287_v44 }
 0x48a   : > { %v1733_v46 = vmul.f32 -1.442695, %v1288_v45 }
 0x48c   : > { %1907 = vpow2.f32 %v1733_v46 }
 0x48f   : > { %v1289_v47 = vpop.f32.mrf.mxu2 }
 0x490   : > { %v1290_v48 = vadd.f32 %v1890_v43, %v1289_v47 }
 0x492   : > { %v1908_v49 = vpop.eup %1907  ;;  %v1734_v50 = vmul.f32 -1.442695, %v1290_v48 }
 0x493   : > { %v1309_v51 = vadd.f32 1.0, %v1908_v49 }
 0x494   : > { %1909 = vpow2.f32 %v1734_v50 }
 0x495   : > { %1911 = vrcp.f32 %v1309_v51  ;;  %v1324_v1 = vand.u32 2147483648, %v1309_v51  ;;  %v1322_v5 = vand.u32 2147483647, %v1309_v51  ;;  %vm1318_vm5 = vweird.f32 %v1309_v51 }
 0x497   : > { %v1292_v54 = vpop.f32.mrf.mxu2  ;;  %v1325_v13 = vor.u32 1.1754944e-38, %v1324_v1  ;;  %vm1323_vm9 = vcmp.eq.f32.partialorder %v1322_v5, 8.507059e+37 }
 0x498   : > { %v1293_v55 = vadd.f32 %v1890_v43, %v1292_v54 }
 0x49a   : > { %v1910_v56 = vpop.eup %1909  ;;  %v1735_v57 = vmul.f32 -1.442695, %v1293_v55 }
 0x49b   : > { %v1912_v58 = vpop.eup %1911  ;;  %v1310_v60 = vadd.f32 1.0, %v1910_v56 }
 0x49c   : > { %v1314_v61 = vmul.f32 %v1912_v58, %v1309_v51  ;;  %1913 = vpow2.f32 %v1735_v57  ;;  %vm1319_vm4 = vweird.f32 %v1912_v58 }
 0x49d   : > { %1915 = vrcp.f32 %v1310_v60  ;;  %vm1320_vm6 = vmor %vm1318_vm5, %vm1319_vm4  ;;  %v1339_v21 = vand.u32 2147483648, %v1310_v60  ;;  %v1337_v24 = vand.u32 2147483647, %v1310_v60  ;;  %vm1333_vm12 = vweird.f32 %v1310_v60 }
 0x49e   : > { %v1315_v62 = vsub.f32 1.0, %v1314_v61 }
 0x49f   : > { %v1294_v3 = vpop.f32.mrf.mxu2  ;;  %vm1338_vm14 = vcmp.eq.f32.partialorder %v1337_v24, 8.507059e+37 }
 0x4a0   : > { %v1316_v4 = vmul.f32 %v1912_v58, %v1315_v62  ;;  %v1295_v8 = vadd.f32 %v1890_v43, %v1294_v3 }
 0x4a2   : > { %v1914_v9 = vpop.eup %1913  ;;  %v1317_v10 = vadd.f32 %v1912_v58, %v1316_v4  ;;  %v1736_v11 = vmul.f32 -1.442695, %v1295_v8 }
 0x4a3   : > { %v1916_v12 = vpop.eup %1915  ;;  %v1311_v14 = vadd.f32 1.0, %v1914_v9 }
 0x4a4   : > { %v1321_v15 = vsel %vm1320_vm6, %v1912_v58, %v1317_v10  ;;  %v1329_v16 = vmul.f32 %v1916_v12, %v1310_v60  ;;  %1917 = vpow2.f32 %v1736_v11  ;;  %vm1334_vm11 = vweird.f32 %v1916_v12 }
 0x4a5   : > { %v1326_v17 = vsel %vm1323_vm9, %v1325_v13, %v1321_v15  ;;  %1919 = vrcp.f32 %v1311_v14  ;;  %vm1335_vm13 = vmor %vm1333_vm12, %vm1334_vm11  ;;  %v1354_v36 = vand.u32 2147483648, %v1311_v14  ;;  %v1352_v39 = vand.u32 2147483647, %v1311_v14 }
 0x4a6   : > { %v1378_v18 = vsel %vm1377_vm8, %v1326_v17, 0.0  ;;  %v1330_v19 = vsub.f32 1.0, %v1329_v16  ;;  %vm1348_vm1 = vweird.f32 %v1311_v14 }
 0x4a7   : > { %v1382_v20 = vsel %vm1376_vm7, %v2580_v6, %v1378_v18  ;;  %v1340_v6 = vor.u32 1.1754944e-38, %v1339_v21  ;;  %v1355_v42 = vor.u32 1.1754944e-38, %v1354_v36  ;;  %vm1353_vm3 = vcmp.eq.f32.partialorder %v1352_v39, 8.507059e+37 }
 0x4a8   : > { %v1386_v22 = vsel %vm1375_vm10, %v2533_v52, %v1382_v20  ;;  %v1331_v23 = vmul.f32 %v1916_v12, %v1330_v19 }
 0x4a9   : > { %1390 = vst.msk [vmem:[%s2611_s29] sm:$0xff] %vm933_vm0, %v1386_v22 }
 0x4aa   : > { %v1918_v27 = vpop.eup %1917  ;;  %v1332_v28 = vadd.f32 %v1916_v12, %v1331_v23 }
 0x4ab   : > { %v1920_v29 = vpop.eup %1919  ;;  %v1312_v30 = vadd.f32 1.0, %v1918_v27 }
 0x4ac   : > { %v1336_v31 = vsel %vm1335_vm13, %v1916_v12, %v1332_v28  ;;  %v1344_v32 = vmul.f32 %v1920_v29, %v1311_v14  ;;  %vm1349_vm15 = vweird.f32 %v1920_v29 }
 0x4ad   : > { %v1341_v52 = vsel %vm1338_vm14, %v1340_v6, %v1336_v31  ;;  %1921 = vrcp.f32 %v1312_v30  ;;  %vm1350_vm2 = vmor %vm1348_vm1, %vm1349_vm15  ;;  %v1369_v47 = vand.u32 2147483648, %v1312_v30  ;;  %v1367_v50 = vand.u32 2147483647, %v1312_v30 }
 0x4ae   : > { %v1379_v33 = vsel %vm1377_vm8, %v1341_v52, 0.0  ;;  %v1345_v34 = vsub.f32 1.0, %v1344_v32  ;;  %vm1363_vm5 = vweird.f32 %v1312_v30 }
 0x4af   : > { %v1383_v35 = vsel %vm1376_vm7, %v2582_v7, %v1379_v33  ;;  %v1370_v54 = vor.u32 1.1754944e-38, %v1369_v47  ;;  %vm1368_vm9 = vcmp.eq.f32.partialorder %v1367_v50, 8.507059e+37 }
 0x4b0   : > { %v1387_v37 = vsel %vm1375_vm10, %v2535_v53, %v1383_v35  ;;  %v1346_v38 = vmul.f32 %v1920_v29, %v1345_v34 }
 0x4b1   : > { %1391 = vst.msk [vmem:[%s2611_s29 + $0x8] sm:$0xff] %vm933_vm0, %v1387_v37 }
 0x4b2   : > { %v1347_v40 = vadd.f32 %v1920_v29, %v1346_v38 }
 0x4b3   : > { %v1922_v41 = vpop.eup %1921 }
 0x4b4   : > { %v1351_v43 = vsel %vm1350_vm2, %v1920_v29, %v1347_v40  ;;  %v1359_v44 = vmul.f32 %v1922_v41, %v1312_v30  ;;  %vm1364_vm4 = vweird.f32 %v1922_v41 }
 0x4b5   : > { %v1356_v7 = vsel %vm1353_vm3, %v1355_v42, %v1351_v43  ;;  %vm1365_vm6 = vmor %vm1363_vm5, %vm1364_vm4 }
 0x4b6   : > { %v1380_v45 = vsel %vm1377_vm8, %v1356_v7, 0.0  ;;  %v1360_v46 = vsub.f32 1.0, %v1359_v44 }
 0x4b7   : > { %v1384_v53 = vsel %vm1376_vm7, %v2587_v25, %v1380_v45 }
 0x4b8   : > { %v1388_v48 = vsel %vm1375_vm10, %v2540_v63, %v1384_v53  ;;  %v1361_v49 = vmul.f32 %v1922_v41, %v1360_v46 }
 0x4b9   : > { %1392 = vst.msk [vmem:[%s2611_s29 + $0x10] sm:$0xff] %vm933_vm0, %v1388_v48 }
 0x4ba   : > { %v1362_v51 = vadd.f32 %v1922_v41, %v1361_v49 }
 0x4bc   : > { %v1366_v55 = vsel %vm1365_vm6, %v1922_v41, %v1362_v51 }
 0x4bd   : > { %v1371_v56 = vsel %vm1368_vm9, %v1370_v54, %v1366_v55  ;;  %1401 = sbr.rel (!%p2313_p11) target bundleno = 1249 (0x4e1), region = 104 }
 0x4be   : > { %v1381_v25 = vsel %vm1377_vm8, %v1371_v56, 0.0 }
 0x4bf   : > { %v1385_v63 = vsel %vm1376_vm7, %v2589_v26, %v1381_v25 }
 0x4c0   : > { %v1389_v57 = vsel %vm1375_vm10, %v2542_v0, %v1385_v63 }
 0x4c1   : > { %1393 = vst.msk [vmem:[%s2611_s29 + $0x18] sm:$0xff] %vm933_vm0, %v1389_v57 }
 0x4c2   : > { %s2781_s26 = smov (!%p1404_p6, %s1403_s26), 4 }
 0x4c3   : > { %s1739_s30 = sshll.u32 %s2781_s26, 3 }
 0x4c4   : > { %s1407_s23 = ssub.s32 32, %s1739_s30 }
 0x4c5   : > { %s1408_s15 = sshll.u32 %s1407_s23, 4 }
 0x4c6   : > { %1409 = vsyncadd %s1395_s24, %s1408_s15  ;;  %p2654_p5 = scmp.ne.s32.totalorder %s1739_s30, 0  ;;  %s1791_s5 = sshll.u32 %s2282_s22, 5 }
 0x4c7   : > { %s2768_s13 = sld [smem:[#allocation28_spill]]  ;;  %s1414_s11 = sshll.u32 %s2611_s29, 4  ;;  %s2663_s11 = int_to_ptr.vmem [resolvable:$true] %s1414_s11 }
 0x4c8   : > { %s1743_s28 = sshll.u32 %s2781_s26, 7  ;;  %s2082_s27 = sshra.s32 %s2663_s11, 4  ;;  %s2083_s27 = int_to_ptr.vmem [resolvable:$true] %s2082_s27 }
 0x4c9   : > { %s2084_s25 = sshrl.u32 %s1743_s28, 4  ;;  %s2178_s22 = smov [#allocation11]  }
 0x4ca   : > { %s2089_s30 = scalar_lea.vmem %s2083_s27, %s2084_s25  ;;  %s2093_s23 = scalar_lea.vmem %s2178_s22, 64 }
 0x4cb   : > { %p2090_p11 = scmp.ne.s32.totalorder %s2083_s27, %s2089_s30  ;;  %p2095_p1 = scmp.lt.s32.totalorder %s2093_s23, %s2089_s30 }
 0x4cd   : > { %s1412_s17 = scalar_lea.hbm %s2768_s13, %s1791_s5  ;;  %p2091_p9 = pnand %p2090_p11, %p2654_p5 }
 0x4ce   : > { %s1416_s18 = sshll.u32 %s1412_s17, 4  ;;  %s2665_s18 = int_to_ptr.hbm [resolvable:$true] %s1416_s18 }
 0x4cf   : > { %p2092_p10 = pneg %p2091_p9 }
 0x4d1   : > { %p2097_p0 = pnand %p2095_p1, %p2092_p10 }
 0x4d3   : > { %2100 = shalt.err (!%p2097_p0)
}
 0x4d4   : > { %s2101_s29 = sshra.s32 %s2665_s18, 4  ;;  %s2112_s8 = scalar_lea.hbm %s2768_s13, 56  ;;  %s2102_s29 = int_to_ptr.hbm [resolvable:$true] %s2101_s29 }
 0x4d5   : > { %s2108_s15 = scalar_lea.hbm %s2102_s29, %s2084_s25  ;;  %p2113_p4 = scmp.lt.s32.totalorder %s2102_s29, %s2768_s13 }
 0x4d6   : > { %p2109_p3 = scmp.ne.s32.totalorder %s2102_s29, %s2108_s15  ;;  %p2114_p12 = scmp.lt.s32.totalorder %s2112_s8, %s2108_s15 }
 0x4d8   : > { %p2110_p7 = pnand %p2109_p3, %p2654_p5  ;;  %p2115_p13 = por %p2114_p12, %p2113_p4 }
 0x4da   : > { %p2111_p8 = pneg %p2110_p7 }
 0x4dc   : > { %p2116_p2 = pnand %p2115_p13, %p2111_p8 }
 0x4de   : > { %2119 = shalt.err (!%p2116_p2)
}
 0x4df   : > { %s2179_s30 = smov 128   ;;  %s2180_s25 = smov 8  }
 0x4e0   : > { %1422 = dma.vmem_to_hbm [thread:$0]  (%p2654_p5), %s2663_s11, %s1743_s28, %s2665_s18, %s1395_s24, %s2179_s30, %s2179_s30, %s2180_s25  }
 0x4e1 PF: > { %s2769_s22 = sld [smem:[#allocation16_spill]]  ;;  %p2772_p11 = scmp.ge.s32.totalorder %s2167_s21, 2 }
 0x4e2   : > { %s2770_s23 = sld [smem:[#allocation20_spill]] }
 0x4e7   : > { %s1431_s29 = sand.u32 1, %s2769_s22  }
 0x4e8   : > { %p2771_p6 = scmp.ne.s32.totalorder %s2770_s23, 0  ;;  %s1432_s15 = scalar_lea.sflag [#allocation4], %s1431_s29 }
 0x4ea   : > { %p1824_p9 = pnand %p2772_p11, %p2771_p6 }
 0x4ec   : > { %p1825_p10 = pneg %p1824_p9 }
 0x4ee   : > { %2150 = dma.done.wait (%p1825_p10), %s1432_s15, 512  }
 0x4ef   : > { %2152 = vsyncadd (%p1825_p10), %s1432_s15, 4294966784  ;;  %s2773_s21 = sld [smem:[#allocation17_spill]]  ;;  %s2775_s18 = smov %s2159_s19 }
 0x4f0   : > { %s2774_s12 = sld [smem:[#allocation18_spill]]  ;;  %s2776_s19 = smov %s2163_s20 }
 0x4f5   : > { %p30_p1 = scmp.ge.s32.totalorder %s2773_s21, 4  }
 0x4f6   : > { %s2777_s20 = smov %s2774_s12 }
 0x4f7   :  { %32 = sbr.rel (!%p30_p1) target bundleno = 16 (0x10), region = 141 }
 0x4fc   :  { %1438 = vsyncpa [#allocation3], 1 }
 0x4fd   :  { %1440 = vsyncpa [#allocation3 + $0x1], 1 }
 0x4fe   :  { %1441 = vsyncpa [#allocation6], 1 }
 0x4ff   :  { %1442 = vsyncpa [#allocation9], 1 }
 0x500   :  { %1443 = vsyncpa [#allocation4], 1 }
 0x501   :  { %1445 = vsyncpa [#allocation4 + $0x1], 1 }

</bundles_post_ra>
